<compile_context>
chip_gen: v6e
topology: v6e:2x2x1
jax: 0.10.0
libtpu: 0.0.40
codegen_flags: <defaults>
</compile_context>

<pallas_src>
import jax
import jax.numpy as jnp
from jax import lax
from jax.experimental import pallas as pl
from jax.experimental.pallas import tpu as pltpu

# Logical (PyTorch) sizes — hidden_size=768 in the module, scaled down here.
B, S, H, C = 2, 8, 32, 7          # batch, seq, hidden_size, num_classes
VOCAB, N_SEG = 64, 2

# TPU tile sizes (lane = 128, sublane = 8).
TB = 8                            # batch rows per grid step (min sublane tile)
HP = 128                          # hidden padded to lane width
CP = 128                          # classifier logits slab (lane-dense output)
SLAB = 128                        # attention-mask slab (lane-dense output)
VOCABP = 128                      # vocab padded to lane width (one-hot gather)
N_SEGP = 16                       # segment table padded to a bf16 sublane tile
BP = ((B + TB - 1) // TB) * TB    # batch padded to a multiple of TB
K = TB * S                        # flattened (batch-tile, seq) rows

MXU_DT = jnp.bfloat16             # MXU operand dtype; accumulation is f32


def bert_classifier_kernel(valid_ref,   # (TB, 1)      i32  valid_length column
                           tok_ref,     # (K, 1)       i32  flattened token ids
                           seg_ref,     # (K, 1)       i32  flattened segment ids
                           w_emb_ref,   # (VOCABP, HP) bf16 word-embedding table
                           s_emb_ref,   # (N_SEGP, HP) bf16 segment-embedding table
                           w_pool_ref,  # (HP, HP)     bf16 synthetic pooler dense
                           b_pool_ref,  # (1, HP)      f32
                           w_cls_ref,   # (HP, CP)     bf16 nn.Linear(hidden, classes)
                           b_cls_ref,   # (1, CP)      f32
                           logits_ref,  # (TB, CP)     f32  out (lane-dense slab)
                           mask_ref):   # (TB, SLAB)   f32  out (lane-dense slab)
    valid = valid_ref[...]                                       # (TB, 1) int32

    # ---- gen_attention_mask: mask[i, :valid[i]] = 1 (lane-dense slab) ----
    pos = lax.broadcasted_iota(jnp.int32, (TB, SLAB), 1)
    mask_ref[...] = (pos < valid).astype(jnp.float32)

    # ---- embedding gather as one-hot MXU matmuls (no scalar loop) ----
    tok = tok_ref[...]                                           # (K, 1) int32
    seg = seg_ref[...]                                           # (K, 1) int32
    oh_tok = (tok == lax.broadcasted_iota(jnp.int32, (K, VOCABP), 1)).astype(MXU_DT)
    oh_seg = (seg == lax.broadcasted_iota(jnp.int32, (K, N_SEGP), 1)).astype(MXU_DT)
    x = (jnp.dot(oh_tok, w_emb_ref[...], preferred_element_type=jnp.float32)
         + jnp.dot(oh_seg, s_emb_ref[...], preferred_element_type=jnp.float32))
    # x: (K, HP) f32 gathered embeddings (never stored to scratch)

    # ---- masked SUM over the sequence as one (TB,K)@(K,HP) MXU matmul ----
    # block-diagonal 0/1 selector: w2[r, k] = (k belongs to row r) & (pos < valid[r])
    colk = lax.broadcasted_iota(jnp.int32, (TB, K), 1)
    rowk = lax.broadcasted_iota(jnp.int32, (TB, K), 0)
    local = colk - rowk * S                                      # seq pos in own row
    w2 = ((local >= 0) & (local < valid)).astype(MXU_DT)         # (TB, K) 0/1
    pooled_sum = jnp.dot(w2, x.astype(MXU_DT),
                         preferred_element_type=jnp.float32)     # (TB, HP)

    # reciprocal applied AFTER the matmul, exact, on a (TB,1) column
    inv_len = 1.0 / jnp.maximum(valid.astype(jnp.float32), 1.0)  # (TB, 1)
    pooled = pooled_sum * inv_len                                # masked mean

    # ---- synthetic BERT pooler stand-in: tanh(dense) ----
    pooler = jnp.tanh(
        jnp.dot(pooled.astype(MXU_DT), w_pool_ref[...],
                preferred_element_type=jnp.float32) + b_pool_ref[...])

    # ---- classifier head: self.classifier = nn.Linear(hidden_size, num_classes)
    logits_ref[...] = (
        jnp.dot(pooler.astype(MXU_DT), w_cls_ref[...],
                preferred_element_type=jnp.float32) + b_cls_ref[...])


def _pad2(a, rows, cols, dtype):
    out = jnp.zeros((rows, cols), dtype)
    return out.at[:a.shape[0], :a.shape[1]].set(a.astype(dtype))


def bert_classifier_forward(token_ids, valid_length, segment_ids, params):
    """token_ids/segment_ids: (B, S) int32, valid_length: (B,) int32."""
    # id / length columns as tiny lane-resident VMEM inputs (layout plumbing)
    tok_col = jnp.zeros((BP * S, 1), jnp.int32).at[:B * S, 0].set(
        token_ids.astype(jnp.int32).reshape(-1))
    seg_col = jnp.zeros((BP * S, 1), jnp.int32).at[:B * S, 0].set(
        segment_ids.astype(jnp.int32).reshape(-1))
    valid_col = jnp.zeros((BP, 1), jnp.int32).at[:B, 0].set(
        jnp.clip(valid_length.astype(jnp.int32), 0, S))

    # zero-pad tables / weights to lane+sublane granularity; MXU operands bf16
    w_emb = _pad2(params["word_emb"], VOCABP, HP, MXU_DT)
    s_emb = _pad2(params["seg_emb"], N_SEGP, HP, MXU_DT)
    w_pool = _pad2(params["w_pool"], HP, HP, MXU_DT)
    b_pool = _pad2(params["b_pool"], 1, HP, jnp.float32)
    w_cls = _pad2(params["w_cls"], HP, CP, MXU_DT)
    b_cls = _pad2(params["b_cls"], 1, CP, jnp.float32)

    logits_p, mask_p = pl.pallas_call(
        bert_classifier_kernel,
        grid_spec=pltpu.PrefetchScalarGridSpec(
            num_scalar_prefetch=0,
            grid=(BP // TB,),                      # batch tiles
            in_specs=[
                pl.BlockSpec((TB, 1), lambda i: (i, 0)),       # valid_length
                pl.BlockSpec((K, 1), lambda i: (i, 0)),        # token ids
                pl.BlockSpec((K, 1), lambda i: (i, 0)),        # segment ids
                # grid-invariant weights / tables
                # TODO(synk): pipeline_mode=pl.Buffered(1) at production H to
                #             halve weight-resident VMEM (matters on v7x).
                pl.BlockSpec((VOCABP, HP), lambda i: (0, 0)),
                pl.BlockSpec((N_SEGP, HP), lambda i: (0, 0)),
                pl.BlockSpec((HP, HP), lambda i: (0, 0)),
                pl.BlockSpec((1, HP), lambda i: (0, 0)),
                pl.BlockSpec((HP, CP), lambda i: (0, 0)),
                pl.BlockSpec((1, CP), lambda i: (0, 0)),
            ],
            out_specs=[
                pl.BlockSpec((TB, CP), lambda i: (i, 0)),
                pl.BlockSpec((TB, SLAB), lambda i: (i, 0)),
            ],
        ),
        out_shape=(jax.ShapeDtypeStruct((BP, CP), jnp.float32),
                   jax.ShapeDtypeStruct((BP, SLAB), jnp.float32)),
        compiler_params=pltpu.CompilerParams(
            dimension_semantics=("parallel",)),
    )(valid_col, tok_col, seg_col, w_emb, s_emb, w_pool, b_pool, w_cls, b_cls)

    # slice the lane-dense slabs back to the logical shapes
    return logits_p[:B, :C], mask_p[:B, :S]


def init_params(key):
    k_we, k_se, k_wp, k_bp, k_wc, k_bc = jax.random.split(key, 6)
    scale_h = 1.0 / jnp.sqrt(H)
    return {
        "word_emb": jax.random.normal(k_we, (VOCAB, H), jnp.float32) * 0.02,
        "seg_emb":  jax.random.normal(k_se, (N_SEG, H), jnp.float32) * 0.02,
        "w_pool":   jax.random.uniform(k_wp, (H, H), jnp.float32, -scale_h, scale_h),
        "b_pool":   jax.random.uniform(k_bp, (1, H), jnp.float32, -scale_h, scale_h),
        # nn.Linear(hidden_size, num_classes) default init ~ U(-1/sqrt(H), 1/sqrt(H))
        "w_cls":    jax.random.uniform(k_wc, (H, C), jnp.float32, -scale_h, scale_h),
        "b_cls":    jax.random.uniform(k_bc, (1, C), jnp.float32, -scale_h, scale_h),
    }


if __name__ == "__main__":
    key = jax.random.PRNGKey(0)
    k_tok, k_seg, k_par = jax.random.split(key, 3)

    token_ids = jax.random.randint(k_tok, (B, S), 0, VOCAB, dtype=jnp.int32)
    segment_ids = jax.random.randint(k_seg, (B, S), 0, N_SEG, dtype=jnp.int32)
    valid_length = jnp.array([5, 8], dtype=jnp.int32)
    params = init_params(k_par)

    logits, attn_mask = bert_classifier_forward(token_ids, valid_length,
                                                segment_ids, params)
    jax.block_until_ready((logits, attn_mask))

    assert logits.shape == (B, C) and logits.dtype == jnp.float32
    assert attn_mask.shape == (B, S)
    # sanity: mask rows have exactly valid_length ones
    assert jnp.allclose(attn_mask.sum(axis=1), valid_length.astype(jnp.float32))

    # pure-JAX f32 reference of the full forward pass (kernel uses bf16 MXU
    # operands with f32 accumulation, so compare at 1e-2).
    x_ref = (params["word_emb"][token_ids]
             + params["seg_emb"][segment_ids]).astype(jnp.float32)
    m_ref = (jnp.arange(S)[None, :] < valid_length[:, None]).astype(jnp.float32)
    pooled_ref = ((x_ref * m_ref[..., None]).sum(axis=1)
                  / jnp.maximum(valid_length, 1)[:, None].astype(jnp.float32))
    pooler_ref = jnp.tanh(pooled_ref @ params["w_pool"] + params["b_pool"])
    logits_ref = pooler_ref @ params["w_cls"] + params["b_cls"]
    assert jnp.allclose(logits, logits_ref, atol=1e-2, rtol=1e-2)
    assert jnp.allclose(attn_mask, m_ref)

    print("KERNEL_OK")
</pallas_src>

<mosaic_0001>
module attributes {stable_mosaic.version = 11 : i64} {
  func.func @bert_classifier_kernel(%arg0: i32, %arg1: memref<8x1xi32, #tpu.memory_space<vmem>>, %arg2: memref<64x1xi32, #tpu.memory_space<vmem>>, %arg3: memref<64x1xi32, #tpu.memory_space<vmem>>, %arg4: memref<128x128xbf16, #tpu.memory_space<vmem>>, %arg5: memref<16x128xbf16, #tpu.memory_space<vmem>>, %arg6: memref<128x128xbf16, #tpu.memory_space<vmem>>, %arg7: memref<1x128xf32, #tpu.memory_space<vmem>>, %arg8: memref<128x128xbf16, #tpu.memory_space<vmem>>, %arg9: memref<1x128xf32, #tpu.memory_space<vmem>>, %arg10: memref<8x128xf32, #tpu.memory_space<vmem>>, %arg11: memref<8x128xf32, #tpu.memory_space<vmem>>) attributes {dimension_semantics = [#tpu.dimension_semantics<parallel>], iteration_bounds = array<i64: 1>, scalar_prefetch = 0 : i64, scratch_operands = 0 : i64, tpu.core_type = #tpu.core_type<tc>, window_params = [{transform_indices = @transform_0, window_bounds = array<i64: 8, 1>}, {transform_indices = @transform_1, window_bounds = array<i64: 64, 1>}, {transform_indices = @transform_2, window_bounds = array<i64: 64, 1>}, {pipeline_mode = #tpu.pipeline_mode<synchronous>, transform_indices = @transform_3, window_bounds = array<i64: 128, 128>}, {pipeline_mode = #tpu.pipeline_mode<synchronous>, transform_indices = @transform_4, window_bounds = array<i64: 16, 128>}, {pipeline_mode = #tpu.pipeline_mode<synchronous>, transform_indices = @transform_5, window_bounds = array<i64: 128, 128>}, {pipeline_mode = #tpu.pipeline_mode<synchronous>, transform_indices = @transform_6, window_bounds = array<i64: 1, 128>}, {pipeline_mode = #tpu.pipeline_mode<synchronous>, transform_indices = @transform_7, window_bounds = array<i64: 128, 128>}, {pipeline_mode = #tpu.pipeline_mode<synchronous>, transform_indices = @transform_8, window_bounds = array<i64: 1, 128>}, {transform_indices = @transform_9, window_bounds = array<i64: 8, 128>}, {transform_indices = @transform_10, window_bounds = array<i64: 8, 128>}]} {
    %c0 = arith.constant 0 : index
    %c0_0 = arith.constant 0 : index
    %0 = vector.load %arg1[%c0, %c0_0] : memref<8x1xi32, #tpu.memory_space<vmem>>, vector<8x1xi32>
    %1 = tpu.iota {dimensions = array<i32: 1>} : vector<8x128xi32>
    %2 = vector.broadcast %0 : vector<8x1xi32> to vector<8x128xi32>
    %3 = arith.cmpi slt, %1, %2 : vector<8x128xi32>
    %4 = arith.extui %3 : vector<8x128xi1> to vector<8x128xi32>
    %5 = arith.sitofp %4 : vector<8x128xi32> to vector<8x128xf32>
    %c0_1 = arith.constant 0 : index
    %c0_2 = arith.constant 0 : index
    %6 = vector.load %arg11[%c0_1, %c0_2] : memref<8x128xf32, #tpu.memory_space<vmem>>, vector<8x128xf32>
    tpu.vector_store %arg11[%c0_1, %c0_2], %5 {strides = array<i32>} : memref<8x128xf32, #tpu.memory_space<vmem>>, vector<8x128xf32>,
    %c0_3 = arith.constant 0 : index
    %c0_4 = arith.constant 0 : index
    %7 = vector.load %arg2[%c0_3, %c0_4] : memref<64x1xi32, #tpu.memory_space<vmem>>, vector<64x1xi32>
    %c0_5 = arith.constant 0 : index
    %c0_6 = arith.constant 0 : index
    %8 = vector.load %arg3[%c0_5, %c0_6] : memref<64x1xi32, #tpu.memory_space<vmem>>, vector<64x1xi32>
    %9 = tpu.iota {dimensions = array<i32: 1>} : vector<64x128xi32>
    %10 = vector.broadcast %7 : vector<64x1xi32> to vector<64x128xi32>
    %11 = arith.cmpi eq, %10, %9 : vector<64x128xi32>
    %12 = arith.extui %11 : vector<64x128xi1> to vector<64x128xi32>
    %13 = arith.sitofp %12 : vector<64x128xi32> to vector<64x128xf32>
    %14 = arith.truncf %13 : vector<64x128xf32> to vector<64x128xbf16>
    %15 = tpu.iota {dimensions = array<i32: 1>} : vector<64x16xi32>
    %16 = vector.broadcast %8 : vector<64x1xi32> to vector<64x16xi32>
    %17 = arith.cmpi eq, %16, %15 : vector<64x16xi32>
    %18 = arith.extui %17 : vector<64x16xi1> to vector<64x16xi32>
    %19 = arith.sitofp %18 : vector<64x16xi32> to vector<64x16xf32>
    %20 = arith.truncf %19 : vector<64x16xf32> to vector<64x16xbf16>
    %c0_7 = arith.constant 0 : index
    %c0_8 = arith.constant 0 : index
    %21 = vector.load %arg4[%c0_7, %c0_8] : memref<128x128xbf16, #tpu.memory_space<vmem>>, vector<128x128xbf16>
    %cst = arith.constant dense<0.000000e+00> : vector<64x128xf32>
    %22 = tpu.matmul %14, %21, %cst {dimension_numbers = #tpu.dot_dimension_numbers<[1], [0], [0], [1], [0, 0, 1, 1], [], []>} : vector<64x128xbf16>, vector<128x128xbf16>, vector<64x128xf32> -> vector<64x128xf32>
    %c0_9 = arith.constant 0 : index
    %c0_10 = arith.constant 0 : index
    %23 = vector.load %arg5[%c0_9, %c0_10] : memref<16x128xbf16, #tpu.memory_space<vmem>>, vector<16x128xbf16>
    %cst_11 = arith.constant dense<0.000000e+00> : vector<64x128xf32>
    %24 = tpu.matmul %20, %23, %cst_11 {dimension_numbers = #tpu.dot_dimension_numbers<[1], [0], [0], [1], [0, 0, 1, 1], [], []>} : vector<64x16xbf16>, vector<16x128xbf16>, vector<64x128xf32> -> vector<64x128xf32>
    %25 = arith.addf %22, %24 : vector<64x128xf32>
    %26 = tpu.iota {dimensions = array<i32: 1>} : vector<8x64xi32>
    %27 = tpu.iota {dimensions = array<i32: 0>} : vector<8x64xi32>
    %c8_i32 = arith.constant 8 : i32
    %28 = vector.broadcast %c8_i32 : i32 to vector<8x64xi32>
    %29 = arith.muli %27, %28 : vector<8x64xi32>
    %30 = arith.subi %26, %29 : vector<8x64xi32>
    %c0_i32 = arith.constant 0 : i32
    %31 = vector.broadcast %c0_i32 : i32 to vector<8x64xi32>
    %32 = arith.cmpi sge, %30, %31 : vector<8x64xi32>
    %33 = vector.broadcast %0 : vector<8x1xi32> to vector<8x64xi32>
    %34 = arith.cmpi slt, %30, %33 : vector<8x64xi32>
    %35 = arith.andi %32, %34 : vector<8x64xi1>
    %36 = arith.extui %35 : vector<8x64xi1> to vector<8x64xi32>
    %37 = arith.sitofp %36 : vector<8x64xi32> to vector<8x64xf32>
    %38 = arith.truncf %37 : vector<8x64xf32> to vector<8x64xbf16>
    %39 = arith.truncf %25 : vector<64x128xf32> to vector<64x128xbf16>
    %cst_12 = arith.constant dense<0.000000e+00> : vector<8x128xf32>
    %40 = tpu.matmul %38, %39, %cst_12 {dimension_numbers = #tpu.dot_dimension_numbers<[1], [0], [0], [1], [0, 0, 1, 1], [], []>} : vector<8x64xbf16>, vector<64x128xbf16>, vector<8x128xf32> -> vector<8x128xf32>
    %41 = arith.sitofp %0 : vector<8x1xi32> to vector<8x1xf32>
    %cst_13 = arith.constant 1.000000e+00 : f32
    %42 = vector.broadcast %cst_13 : f32 to vector<8x1xf32>
    %43 = arith.maximumf %41, %42 : vector<8x1xf32>
    %cst_14 = arith.constant 1.000000e+00 : f32
    %44 = vector.broadcast %cst_14 : f32 to vector<8x1xf32>
    %45 = arith.divf %44, %43 : vector<8x1xf32>
    %46 = vector.broadcast %45 : vector<8x1xf32> to vector<8x128xf32>
    %47 = arith.mulf %40, %46 : vector<8x128xf32>
    %48 = arith.truncf %47 : vector<8x128xf32> to vector<8x128xbf16>
    %c0_15 = arith.constant 0 : index
    %c0_16 = arith.constant 0 : index
    %49 = vector.load %arg6[%c0_15, %c0_16] : memref<128x128xbf16, #tpu.memory_space<vmem>>, vector<128x128xbf16>
    %cst_17 = arith.constant dense<0.000000e+00> : vector<8x128xf32>
    %50 = tpu.matmul %48, %49, %cst_17 {dimension_numbers = #tpu.dot_dimension_numbers<[1], [0], [0], [1], [0, 0, 1, 1], [], []>} : vector<8x128xbf16>, vector<128x128xbf16>, vector<8x128xf32> -> vector<8x128xf32>
    %c0_18 = arith.constant 0 : index
    %c0_19 = arith.constant 0 : index
    %51 = vector.load %arg7[%c0_18, %c0_19] : memref<1x128xf32, #tpu.memory_space<vmem>>, vector<1x128xf32>
    %52 = vector.broadcast %51 : vector<1x128xf32> to vector<8x128xf32>
    %53 = arith.addf %50, %52 : vector<8x128xf32>
    %54 = math.tanh %53 : vector<8x128xf32>
    %55 = arith.truncf %54 : vector<8x128xf32> to vector<8x128xbf16>
    %c0_20 = arith.constant 0 : index
    %c0_21 = arith.constant 0 : index
    %56 = vector.load %arg8[%c0_20, %c0_21] : memref<128x128xbf16, #tpu.memory_space<vmem>>, vector<128x128xbf16>
    %cst_22 = arith.constant dense<0.000000e+00> : vector<8x128xf32>
    %57 = tpu.matmul %55, %56, %cst_22 {dimension_numbers = #tpu.dot_dimension_numbers<[1], [0], [0], [1], [0, 0, 1, 1], [], []>} : vector<8x128xbf16>, vector<128x128xbf16>, vector<8x128xf32> -> vector<8x128xf32>
    %c0_23 = arith.constant 0 : index
    %c0_24 = arith.constant 0 : index
    %58 = vector.load %arg9[%c0_23, %c0_24] : memref<1x128xf32, #tpu.memory_space<vmem>>, vector<1x128xf32>
    %59 = vector.broadcast %58 : vector<1x128xf32> to vector<8x128xf32>
    %60 = arith.addf %57, %59 : vector<8x128xf32>
    %c0_25 = arith.constant 0 : index
    %c0_26 = arith.constant 0 : index
    %61 = vector.load %arg10[%c0_25, %c0_26] : memref<8x128xf32, #tpu.memory_space<vmem>>, vector<8x128xf32>
    tpu.vector_store %arg10[%c0_25, %c0_26], %60 {strides = array<i32>} : memref<8x128xf32, #tpu.memory_space<vmem>>, vector<8x128xf32>,
    return
  }
  func.func @transform_0(%arg0: i32) -> (i32, i32) {
    %c0_i32 = arith.constant 0 : i32
    %c0_i32_0 = arith.constant 0 : i32
    return %arg0, %c0_i32 : i32, i32
  }
  func.func @transform_1(%arg0: i32) -> (i32, i32) {
    %c0_i32 = arith.constant 0 : i32
    %c0_i32_0 = arith.constant 0 : i32
    return %arg0, %c0_i32 : i32, i32
  }
  func.func @transform_2(%arg0: i32) -> (i32, i32) {
    %c0_i32 = arith.constant 0 : i32
    %c0_i32_0 = arith.constant 0 : i32
    return %arg0, %c0_i32 : i32, i32
  }
  func.func @transform_3(%arg0: i32) -> (i32, i32) {
    %c0_i32 = arith.constant 0 : i32
    %c0_i32_0 = arith.constant 0 : i32
    %c0_i32_1 = arith.constant 0 : i32
    return %c0_i32, %c0_i32_0 : i32, i32
  }
  func.func @transform_4(%arg0: i32) -> (i32, i32) {
    %c0_i32 = arith.constant 0 : i32
    %c0_i32_0 = arith.constant 0 : i32
    %c0_i32_1 = arith.constant 0 : i32
    return %c0_i32, %c0_i32_0 : i32, i32
  }
  func.func @transform_5(%arg0: i32) -> (i32, i32) {
    %c0_i32 = arith.constant 0 : i32
    %c0_i32_0 = arith.constant 0 : i32
    %c0_i32_1 = arith.constant 0 : i32
    return %c0_i32, %c0_i32_0 : i32, i32
  }
  func.func @transform_6(%arg0: i32) -> (i32, i32) {
    %c0_i32 = arith.constant 0 : i32
    %c0_i32_0 = arith.constant 0 : i32
    %c0_i32_1 = arith.constant 0 : i32
    return %c0_i32, %c0_i32_0 : i32, i32
  }
  func.func @transform_7(%arg0: i32) -> (i32, i32) {
    %c0_i32 = arith.constant 0 : i32
    %c0_i32_0 = arith.constant 0 : i32
    %c0_i32_1 = arith.constant 0 : i32
    return %c0_i32, %c0_i32_0 : i32, i32
  }
  func.func @transform_8(%arg0: i32) -> (i32, i32) {
    %c0_i32 = arith.constant 0 : i32
    %c0_i32_0 = arith.constant 0 : i32
    %c0_i32_1 = arith.constant 0 : i32
    return %c0_i32, %c0_i32_0 : i32, i32
  }
  func.func @transform_9(%arg0: i32) -> (i32, i32) {
    %c0_i32 = arith.constant 0 : i32
    %c0_i32_0 = arith.constant 0 : i32
    return %arg0, %c0_i32 : i32, i32
  }
  func.func @transform_10(%arg0: i32) -> (i32, i32) {
    %c0_i32 = arith.constant 0 : i32
    %c0_i32_0 = arith.constant 0 : i32
    return %arg0, %c0_i32 : i32, i32
  }
}

</mosaic_0001>

<bundles_post_ra>
// kernel: tpu_custom_call.1
= control target key start
LH: loop header
LB: loop body
LE: loop exit
PB: predicated region body
PF: predicated region fallthrough
CT: control target
= control target key end

     0   :  { %16 = vsyncpa [#allocation3], 0  ;;  %s1256_s0 = inlined_call_operand.vmem [shape: s32[8,1], index: 0, kind: input, shape index: {}]   ;;  %s1257_s1 = inlined_call_operand.vmem [shape: s32[64,1], index: 1, kind: input, shape index: {}]   ;;  %s1258_s2 = inlined_call_operand.vmem [shape: s32[64,1], index: 2, kind: input, shape index: {}]   ;;  %s1259_s3 = inlined_call_operand.vmem [shape: bf16[128,128], index: 3, kind: input, shape index: {}]   ;;  %s1260_s4 = inlined_call_operand.vmem [shape: bf16[16,128], index: 4, kind: input, shape index: {}]   ;;  %s1261_s5 = inlined_call_operand.vmem [shape: bf16[128,128], index: 5, kind: input, shape index: {}]   ;;  %s1262_s6 = inlined_call_operand.vmem [shape: f32[1,128], index: 6, kind: input, shape index: {}]   ;;  %s1263_s7 = inlined_call_operand.hbm [shape: bf16[128,128], index: 7, kind: input, shape index: {}]   ;;  %s1264_s8 = inlined_call_operand.vmem [shape: f32[1,128], index: 8, kind: input, shape index: {}]   ;;  %s1265_s9 = inlined_call_operand.hbm [shape: f32[8,128], index: 9, kind: output, shape index: {0}]   ;;  %s1266_s10 = inlined_call_operand.hbm [shape: f32[8,128], index: 10, kind: output, shape index: {1}]  }
   0x1   :  { %17 = vsyncpa [#allocation4], 0 }
   0x2   :  { %18 = vsyncpa [#allocation7], 0  ;;  %s1009_s13 = smov [#allocation2]  }
   0x3   :  { %s38_s14 = sshll.u32 %s1009_s13, 4  ;;  %s39_s14 = int_to_ptr.vmem [resolvable:$true] %s38_s14 }
   0x4   :  { %s951_s15 = scalar_lea.vmem %s39_s14, 1024  ;;  %p956_p1 = scmp.lt.s32.totalorder %s39_s14, %s39_s14 }
   0x5   :  { %p952_p0 = scmp.ne.s32.totalorder %s39_s14, %s951_s15  ;;  %p957_p2 = scmp.lt.s32.totalorder %s951_s15, %s951_s15 }
   0x7   :  { %p958_p3 = por %p957_p2, %p956_p1 }
   0x9   :  { %p959_p4 = pnand %p958_p3, %p952_p0 }
   0xb   :  { %962 = shalt.err (!%p959_p4)
}
   0xc   :  { %s1010_s16 = smov 64   ;;  %s1011_s17 = smov 4  }
   0xd   :  { %44 = dma.hbm_to_vmem [thread:$0]  %s1263_s7, 1024, %s39_s14, [#allocation3], %s1010_s16, %s1010_s16, %s1011_s17  }
   0xe   :  { %1003 = dma.done.wait [#allocation3], 1024  }
   0xf   :  { %1004 = vsyncadd [#allocation3], 4294966272  ;;  %v1012_v0 = vmov 0   ;;  %v71_v1 = vld [vmem:[%s1258_s2 + $0x10] sm:$0xff]  ;;  %v69_v2 = vld [vmem:[%s1258_s2] sm:$0xff]  ;;  %v1013_v21 = vmov 0.0   ;;  %v52_v31 = vlaneseq }
  0x10   :  { %913 = vset.pattern.permute.xlu1 %v1012_v0  ;;  %912 = vset.pattern.permute.xlu0 %v1012_v0  ;;  %v72_v3 = vld [vmem:[%s1258_s2 + $0x18] sm:$0xff]  ;;  %v70_v4 = vld [vmem:[%s1258_s2 + $0x8] sm:$0xff]  ;;  %v61_v6 = vld [vmem:[%s1257_s1] sm:$0xff]  ;;  %vm205_vm4 = vcmask 130048   ;;  %v1014_v45 = vmov 1.0|1.0  }
  0x11   :  { %136 = vperm.xlu1 %913, %v71_v1   ;;  %130 = vperm.xlu0 %912, %v69_v2   ;;  %v62_v5 = vld [vmem:[%s1257_s1 + $0x8] sm:$0xff]  ;;  %v51_v7 = vld [vmem:[%s1256_s0] sm:$0xff]  ;;  %v914_v8 = vld [vmem:[%s1259_s3 + $0x38] sm:$0xff]   ;;  %v1156_v32 = vand.u32 127, %v52_v31  ;;  %v397_v53 = vshrl.u32 %v52_v31, 7  ;;  %s1016_s18 = smov [#allocation6]  }
  0x12   :  { %v915_v9 = vld [vmem:[%s1259_s3 + $0x30] sm:$0xff]   ;;  %827 = vmatprep.subr.bf16.mxu1 %v914_v8  ;;  %v64_v10 = vld [vmem:[%s1257_s1 + $0x18] sm:$0xff]  ;;  %v454_v11 = vcvt.s32.f32 %v51_v7  ;;  %v916_v13 = vld [vmem:[%s1259_s3 + $0x28] sm:$0xff]   ;;  %s706_s19 = sshll.u32 %s1016_s18, 4  ;;  %s707_s19 = int_to_ptr.vmem [resolvable:$true] %s706_s19 }
  0x13   :  { %v63_v12 = vld [vmem:[%s1257_s1 + $0x10] sm:$0xff]  ;;  %828 = vmatpush3.bf16.msra.mxu1 %v914_v8  ;;  %v920_v14 = vld [vmem:[%s1260_s4] sm:$0xff]   ;;  %v74_v15 = vld [vmem:[%s1258_s2 + $0x28] sm:$0xff]  ;;  %v398_v59 = vmul.u32 8, %v397_v53  ;;  %s963_s20 = scalar_lea.vmem %s707_s19, 128  ;;  %p968_p6 = scmp.lt.s32.totalorder %s707_s19, %s707_s19 }
  0x14   :  { %829 = vmatprep.subr.bf16.mxu1 %v915_v9  ;;  %v455_v16 = vmax.f32 %v454_v11, 1.0  ;;  %v73_v17 = vld [vmem:[%s1258_s2 + $0x20] sm:$0xff]  ;;  %817 = vmatprep.subr.bf16.mxu0 %v920_v14  ;;  %v76_v19 = vld [vmem:[%s1258_s2 + $0x38] sm:$0xff]  ;;  %v75_v20 = vld [vmem:[%s1258_s2 + $0x30] sm:$0xff]  ;;  %p964_p5 = scmp.ne.s32.totalorder %s707_s19, %s963_s20  ;;  %p969_p7 = scmp.lt.s32.totalorder %s963_s20, %s963_s20 }
  0x15   :  { %139 = vperm.xlu1 %913, %v72_v3   ;;  %133 = vperm.xlu0 %912, %v70_v4   ;;  %v917_v18 = vld [vmem:[%s1259_s3 + $0x20] sm:$0xff]   ;;  %v918_v22 = vld [vmem:[%s1259_s3 + $0x18] sm:$0xff]   ;;  %v66_v23 = vld [vmem:[%s1257_s1 + $0x28] sm:$0xff]  ;;  %v399_v62 = vsub.s32 %v1156_v32, %v398_v59 }
  0x16   :  { %818 = vmatpush3.bf16.msra.mxu0 %v920_v14  ;;  %939 = vrcp.f32 %v455_v16  ;;  %v65_v24 = vld [vmem:[%s1257_s1 + $0x20] sm:$0xff]  ;;  %v919_v25 = vld [vmem:[%s1259_s3 + $0x10] sm:$0xff]   ;;  %v68_v26 = vld [vmem:[%s1257_s1 + $0x38] sm:$0xff]  ;;  %p970_p8 = por %p969_p7, %p968_p6 }
  0x17   :  { %830 = vmatpush3.bf16.msra.mxu1 %v915_v9  ;;  %851 = vmatprep.subr.bf16.mxu0 %v1013_v21  ;;  %v67_v27 = vld [vmem:[%s1257_s1 + $0x30] sm:$0xff]  ;;  %v921_v28 = vld [vmem:[%s1259_s3 + $0x8] sm:$0xff]   ;;  %v922_v30 = vld [vmem:[%s1259_s3] sm:$0xff]  }
  0x18   :  { %831 = vmatprep.subr.bf16.mxu1 %v916_v13  ;;  %v934_v53 = vld [vmem:[#allocation2 + $0x20] sm:$0xff]   ;;  %p971_p9 = pnand %p970_p8, %p964_p5 }
  0x19   :  { %81 = vperm.xlu1 %913, %v62_v5   ;;  %78 = vperm.xlu0 %912, %v61_v6  }
  0x1b   :  { %832 = vmatpush3.bf16.msra.mxu1 %v916_v13 }
  0x1c   :  { %833 = vmatprep.subr.bf16.mxu1 %v917_v18 }
  0x1d   :  { %87 = vperm.xlu1 %913, %v64_v10   ;;  %84 = vperm.xlu0 %912, %v63_v12  }
  0x1f   :  { %834 = vmatpush3.bf16.msra.mxu1 %v917_v18 }
  0x20   :  { %835 = vmatprep.subr.bf16.mxu1 %v918_v22 }
  0x21   :  { %145 = vperm.xlu1 %913, %v74_v15   ;;  %142 = vperm.xlu0 %912, %v73_v17  }
  0x23   :  { %836 = vmatpush3.bf16.msra.mxu1 %v918_v22  ;;  %v940_v29 = vpop.eup %939 }
  0x24   :  { %837 = vmatprep.subr.bf16.mxu1 %v919_v25 }
  0x25   :  { %151 = vperm.xlu1 %913, %v76_v19   ;;  %148 = vperm.xlu0 %912, %v75_v20  }
  0x27   :  { %838 = vmatpush3.bf16.msra.mxu1 %v919_v25 }
  0x28   :  { %839 = vmatprep.subr.bf16.mxu1 %v921_v28 }
  0x29   :  { %93 = vperm.xlu1 %913, %v66_v23   ;;  %90 = vperm.xlu0 %912, %v65_v24  }
  0x2b   :  { %840 = vmatpush3.bf16.msra.mxu1 %v921_v28 }
  0x2c   :  { %841 = vmatprep.subr.bf16.mxu1 %v922_v30 }
  0x2d   :  { %99 = vperm.xlu1 %913, %v68_v26   ;;  %96 = vperm.xlu0 %912, %v67_v27  }
  0x2f   :  { %842 = vmatpush3.bf16.msra.mxu1 %v922_v30 }
  0x30   :  { %883 = vmatprep.subr.bf16.mxu1 %v1013_v21 }
  0x31   :  { %55 = vperm.xlu0 %912, %v51_v7   ;;  %460 = vperm.xlu1 %913, %v940_v29  }
  0x8c   :  { %v137_v33 = vpop.permute.xlu1 %136  ;;  %v131_v34 = vpop.permute.xlu0 %130 }
  0x8d   :  { %vm155_vm0 = vcmp.eq.s32.totalorder %v137_v33, %v1156_v32  ;;  %vm153_vm1 = vcmp.eq.s32.totalorder %v131_v34, %v1156_v32  ;;  %v923_v34 = vld [vmem:[%s1261_s5 + $0x38] sm:$0xff]  }
  0x8e   :  { %v730_v37 = vsel %vm155_vm0, 1.0, %v1013_v21  ;;  %v728_v38 = vsel %vm153_vm1, 1.0, %v1013_v21 }
  0x90   :  { %v140_v35 = vpop.permute.xlu1 %139  ;;  %v134_v36 = vpop.permute.xlu0 %133 }
  0x91   :  { %vm156_vm2 = vcmp.eq.s32.totalorder %v140_v35, %v1156_v32  ;;  %vm154_vm3 = vcmp.eq.s32.totalorder %v134_v36, %v1156_v32  ;;  %v924_v36 = vld [vmem:[%s1261_s5 + $0x30] sm:$0xff]  }
  0x92   :  { %v731_v39 = vsel %vm156_vm2, 1.0, %v1013_v21  ;;  %v729_v40 = vsel %vm154_vm3, 1.0, %v1013_v21 }
  0x93   :  { %v178_v41 = vpack.c.bf16 %v731_v39, %v730_v37  ;;  %v177_v42 = vpack.c.bf16 %v729_v40, %v728_v38  ;;  %v925_v37 = vld [vmem:[%s1261_s5 + $0x28] sm:$0xff]   ;;  %v926_v38 = vld [vmem:[%s1261_s5 + $0x20] sm:$0xff]   ;;  %v927_v39 = vld [vmem:[%s1261_s5 + $0x18] sm:$0xff]  }
  0x94   :  { %v82_v43 = vpop.permute.xlu1 %81  ;;  %v79_v44 = vpop.permute.xlu0 %78  ;;  %v928_v40 = vld [vmem:[%s1261_s5 + $0x10] sm:$0xff]  }
  0x95   :  { %vm102_vm5 = vcmp.eq.s32.totalorder %v82_v43, %v1156_v32  ;;  %vm101_vm6 = vcmp.eq.s32.totalorder %v79_v44, %v1156_v32  ;;  %819 = vmatprep.mubr.msk.bf16.mxu0 %vm205_vm4, %v177_v42  ;;  %v930_v42 = vld [vmem:[%s1261_s5] sm:$0xff]   ;;  %v931_v43 = vld [vmem:[#allocation2 + $0x38] sm:$0xff]   ;;  %v932_v44 = vld [vmem:[#allocation2 + $0x30] sm:$0xff]  }
  0x96   :  { %820 = vmatmul.mubr.msk.bf16.vlgmr.msra.gmra.mxu0 %vm205_vm4, %v178_v41  ;;  %vm749_vm7 = vmpackc.low %vm102_vm5, %vm101_vm6  ;;  %vm400_vm6 = vcmp.ge.s32.totalorder %v399_v62, 0  ;;  %v929_v41 = vld [vmem:[%s1261_s5 + $0x8] sm:$0xff]  }
  0x97   :  { %843 = vmatprep.mubr.msk.bf16.mxu1 %vm749_vm7, %v1014_v45 }
  0x98   :  { %v88_v46 = vpop.permute.xlu1 %87  ;;  %v85_v47 = vpop.permute.xlu0 %84 }
  0x99   :  { %vm104_vm8 = vcmp.eq.s32.totalorder %v88_v46, %v1156_v32  ;;  %vm103_vm9 = vcmp.eq.s32.totalorder %v85_v47, %v1156_v32 }
  0x9a   :  { %vm751_vm10 = vmpackc.low %vm104_vm8, %vm103_vm9  ;;  %vm1015_vm9 = vmmov 0  }
  0x9b   :  { %844 = vmatmul.mubr.msk.bf16.vlgmr.msra.gmra.mxu1 %vm751_vm10, %v1014_v45  ;;  %vm410_vm10 = vcmask 523264  }
  0x9c   :  { %v146_v48 = vpop.permute.xlu1 %145  ;;  %v143_v49 = vpop.permute.xlu0 %142  ;;  %884 = vmatpush3.bf16.msra.mxu1 %v931_v43 }
  0x9d   :  { %vm158_vm11 = vcmp.eq.s32.totalorder %v146_v48, %v1156_v32  ;;  %vm157_vm12 = vcmp.eq.s32.totalorder %v143_v49, %v1156_v32  ;;  %885 = vmatprep.subr.bf16.mxu1 %v1013_v21 }
  0x9e   :  { %v733_v50 = vsel %vm158_vm11, 1.0, %v1013_v21  ;;  %v732_v51 = vsel %vm157_vm12, 1.0, %v1013_v21 }
  0x9f   :  { %v179_v52 = vpack.c.bf16 %v733_v50, %v732_v51 }
  0xa0   :  { %v152_v54 = vpop.permute.xlu1 %151  ;;  %v149_v55 = vpop.permute.xlu0 %148  ;;  %886 = vmatpush3.bf16.msra.mxu1 %v932_v44 }
  0xa1   :  { %vm160_vm13 = vcmp.eq.s32.totalorder %v152_v54, %v1156_v32  ;;  %vm159_vm14 = vcmp.eq.s32.totalorder %v149_v55, %v1156_v32  ;;  %823 = vmatprep.mubr.msk.bf16.mxu0 %vm205_vm4, %v179_v52  ;;  %887 = vmatprep.subr.bf16.mxu1 %v1013_v21  ;;  %v935_v54 = vld [vmem:[#allocation2 + $0x18] sm:$0xff]   ;;  %v936_v55 = vld [vmem:[#allocation2 + $0x10] sm:$0xff]  }
  0xa2   :  { %v735_v56 = vsel %vm160_vm13, 1.0, %v1013_v21  ;;  %v734_v57 = vsel %vm159_vm14, 1.0, %v1013_v21 }
  0xa3   :  { %v180_v58 = vpack.c.bf16 %v735_v56, %v734_v57  ;;  %v937_v56 = vld [vmem:[#allocation2 + $0x8] sm:$0xff]   ;;  %v938_v57 = vld [vmem:[#allocation2] sm:$0xff]  }
  0xa4   :  { %v94_v60 = vpop.permute.xlu1 %93  ;;  %v91_v61 = vpop.permute.xlu0 %90 }
  0xa5   :  { %vm106_vm15 = vcmp.eq.s32.totalorder %v94_v60, %v1156_v32  ;;  %vm105_vm0 = vcmp.eq.s32.totalorder %v91_v61, %v1156_v32  ;;  %824 = vmatmul.mubr.msk.bf16.gmra.mxu0 %vm205_vm4, %v180_v58  ;;  %v759_v58 = vld [vmem:[%s1262_s6] ss:$0 sm:$0xff] }
  0xa6   :  { %vm753_vm1 = vmpackc.low %vm106_vm15, %vm105_vm0  ;;  %859 = vmatprep.mubr.msk.bf16.mxu0 %vm1015_vm9, %v1013_v21 }
  0xa7   :  { %847 = vmatprep.mubr.msk.bf16.mxu1 %vm753_vm1, %v1014_v45 }
  0xa8   :  { %v100_v63 = vpop.permute.xlu1 %99  ;;  %v97_v0 = vpop.permute.xlu0 %96 }
  0xa9   :  { %vm108_vm2 = vcmp.eq.s32.totalorder %v100_v63, %v1156_v32  ;;  %vm107_vm3 = vcmp.eq.s32.totalorder %v97_v0, %v1156_v32 }
  0xaa   :  { %vm755_vm5 = vmpackc.low %vm108_vm2, %vm107_vm3 }
  0xab   :  { %848 = vmatmul.mubr.msk.bf16.gmra.mxu1 %vm755_vm5, %v1014_v45  ;;  %v933_v45 = vld [vmem:[#allocation2 + $0x28] sm:$0xff]  }
  0xac   :  { %v56_v1 = vpop.permute.xlu0 %55  ;;  %899 = vmatprep.mubr.msk.bf16.mxu1 %vm1015_vm9, %v1013_v21  ;;  %888 = vmatpush3.bf16.msra.mxu1 %v933_v45  ;;  %v461_v46 = vpop.permute.xlu1 %460 }
  0xad   :  { %vm57_vm7 = vcmp.lt.s32.totalorder %v1156_v32, %v56_v1  ;;  %vm401_vm8 = vcmp.lt.s32.totalorder %v399_v62, %v56_v1  ;;  %889 = vmatprep.subr.bf16.mxu1 %v1013_v21 }
  0xae   :  { %v719_v2 = vsel %vm57_vm7, 1.0, %v1013_v21  ;;  %vm1189_vm4 = vmand %vm400_vm6, %vm401_vm8 }
  0xaf   :  { %60 = vst [vmem:[#allocation6] sm:$0xff] %v719_v2  ;;  %v757_v32 = vsel %vm1189_vm4, 1.0, %v1013_v21 }
  0xb0   :  { %v405_v35 = vpack.c.bf16 %v757_v32, %v757_v32  ;;  %890 = vmatpush3.bf16.msra.mxu1 %v934_v53 }
  0xb1   :  { %891 = vmatprep.subr.bf16.mxu1 %v1013_v21 }
  0xb4   :  { %892 = vmatpush3.bf16.msra.mxu1 %v935_v54 }
  0xb5   :  { %893 = vmatprep.subr.bf16.mxu1 %v1013_v21 }
  0xb8   :  { %894 = vmatpush3.bf16.msra.mxu1 %v936_v55 }
  0xb9   :  { %895 = vmatprep.subr.bf16.mxu1 %v1013_v21 }
  0xbc   :  { %896 = vmatpush3.bf16.msra.mxu1 %v937_v56 }
  0xbd   :  { %897 = vmatprep.subr.bf16.mxu1 %v1013_v21 }
  0xc0   :  { %898 = vmatpush3.bf16.msra.mxu1 %v938_v57 }
 0x156   :  { %v821_v4 = vpop.f32.mrf.mxu0 }
 0x158   :  { %v252_v5 = vpop.f32.mrf.mxu0 }
 0x15a   :  { %v822_v7 = vpop.f32.mrf.mxu0 }
 0x15b   :  { %v845_v6 = vpop.f32.mrf.mxu1 }
 0x15c   :  { %v255_v9 = vpop.f32.mrf.mxu0  ;;  %v374_v28 = vadd.f32 %v845_v6, %v821_v4 }
 0x15d   :  { %v365_v8 = vpop.f32.mrf.mxu1 }
 0x15e   :  { %v366_v31 = vadd.f32 %v365_v8, %v252_v5 }
 0x15f   :  { %v846_v10 = vpop.f32.mrf.mxu1 }
 0x160   :  { %v377_v26 = vadd.f32 %v846_v10, %v822_v7 }
 0x161   :  { %v368_v12 = vpop.f32.mrf.mxu1 }
 0x162   :  { %v407_v29 = vpack.c.bf16 %v377_v26, %v374_v28  ;;  %v369_v30 = vadd.f32 %v368_v12, %v255_v9 }
 0x164   :  { %v406_v33 = vpack.c.bf16 %v369_v30, %v366_v31 }
 0x165   :  { %v825_v11 = vpop.f32.mrf.mxu0 }
 0x167   :  { %v268_v13 = vpop.f32.mrf.mxu0 }
 0x169   :  { %v826_v15 = vpop.f32.mrf.mxu0 }
 0x16b   :  { %v849_v14 = vpop.f32.mrf.mxu1  ;;  %v271_v20 = vpop.f32.mrf.mxu0 }
 0x16c   :  { %v390_v18 = vadd.f32 %v849_v14, %v825_v11 }
 0x16d   :  { %v381_v16 = vpop.f32.mrf.mxu1 }
 0x16e   :  { %v382_v25 = vadd.f32 %v381_v16, %v268_v13 }
 0x16f   :  { %v850_v17 = vpop.f32.mrf.mxu1 }
 0x170   :  { %v393_v19 = vadd.f32 %v850_v17, %v826_v15 }
 0x171   :  { %v384_v22 = vpop.f32.mrf.mxu1 }
 0x172   :  { %v409_v23 = vpack.c.bf16 %v393_v19, %v390_v18  ;;  %v385_v24 = vadd.f32 %v384_v22, %v271_v20 }
 0x174   :  { %852 = vmatpush3.bf16.msra.mxu0 %v409_v23  ;;  %v408_v27 = vpack.c.bf16 %v385_v24, %v382_v25 }
 0x175   :  { %853 = vmatprep.subr.bf16.mxu0 %v1013_v21 }
 0x178   :  { %854 = vmatpush3.bf16.msra.mxu0 %v408_v27 }
 0x179   :  { %855 = vmatprep.subr.bf16.mxu0 %v1013_v21 }
 0x17c   :  { %856 = vmatpush3.bf16.msra.mxu0 %v407_v29 }
 0x17d   :  { %857 = vmatprep.subr.bf16.mxu0 %v1013_v21 }
 0x180   :  { %858 = vmatpush3.bf16.msra.mxu0 %v406_v33 }
 0x181   :  { %863 = vmatprep.subr.bf16.mxu0 %v1013_v21 }
 0x183   :  { %860 = vmatmul.mubr.msk.bf16.vlgmr.msra.gmra.mxu0 %vm410_vm10, %v405_v35 }
 0x184   :  { %864 = vmatpush3.bf16.msra.mxu0 %v923_v34  ;;  %879 = vmatprep.mubr.msk.bf16.mxu0 %vm1015_vm9, %v1013_v21 }
 0x185   :  { %865 = vmatprep.subr.bf16.mxu0 %v1013_v21 }
 0x188   :  { %866 = vmatpush3.bf16.msra.mxu0 %v924_v36 }
 0x189   :  { %867 = vmatprep.subr.bf16.mxu0 %v1013_v21 }
 0x18c   :  { %868 = vmatpush3.bf16.msra.mxu0 %v925_v37 }
 0x18d   :  { %869 = vmatprep.subr.bf16.mxu0 %v1013_v21 }
 0x190   :  { %870 = vmatpush3.bf16.msra.mxu0 %v926_v38 }
 0x191   :  { %871 = vmatprep.subr.bf16.mxu0 %v1013_v21 }
 0x194   :  { %872 = vmatpush3.bf16.msra.mxu0 %v927_v39 }
 0x195   :  { %873 = vmatprep.subr.bf16.mxu0 %v1013_v21 }
 0x198   :  { %874 = vmatpush3.bf16.msra.mxu0 %v928_v40 }
 0x199   :  { %875 = vmatprep.subr.bf16.mxu0 %v1013_v21 }
 0x19c   :  { %876 = vmatpush3.bf16.msra.mxu0 %v929_v41 }
 0x19d   :  { %877 = vmatprep.subr.bf16.mxu0 %v1013_v21 }
 0x1a0   :  { %878 = vmatpush3.bf16.msra.mxu0 %v930_v42 }
 0x243   :  { %v448_v47 = vpop.f32.mrf.mxu0 }
 0x244   :  { %v463_v48 = vmul.f32 %v461_v46, %v448_v47 }
 0x245   :  { %v861_v49 = vpop.f32.mrf.mxu0 }
 0x246   :  { %v464_v50 = vpack.c.bf16 %v463_v48, %v463_v48 }
 0x247   :  { %v451_v51 = vpop.f32.mrf.mxu0 }
 0x248   :  { %880 = vmatmul.mubr.bf16.vlgmr.msra.gmra.mxu0 %v464_v50 }
 0x249   :  { %v862_v52 = vpop.f32.mrf.mxu0 }
 0x308   :  { %v570_v59 = vpop.f32.mrf.mxu0 }
 0x309   :  { %v571_v60 = vadd.f32 %v759_v58, %v570_v59 }
 0x30a   :  { %v881_v61 = vpop.f32.mrf.mxu0 }
 0x30b   :  { %941 = vtanh.f32 %v571_v60 }
 0x30c   :  { %v573_v62 = vpop.f32.mrf.mxu0 }
 0x30e   :  { %v882_v63 = vpop.f32.mrf.mxu0 }
 0x318   :  { %v942_v0 = vpop.eup %941 }
 0x319   :  { %v577_v1 = vpack.c.bf16 %v942_v0, %v942_v0 }
 0x31b   :  { %900 = vmatmul.mubr.bf16.vlgmr.msra.gmra.mxu1 %v577_v1 }
 0x31c   :  { %974 = shalt.err (!%p971_p9)
}
 0x31d   :  { %709 = dma.vmem_to_hbm [thread:$0]  %s707_s19, 128, %s1266_s10, [#allocation7]   ;;  %v768_v21 = vld [vmem:[%s1264_s8] ss:$0 sm:$0xff] }
 0x31e   :  { %s1017_s23 = smov [#allocation5]  }
 0x31f   :  { %s696_s24 = sshll.u32 %s1017_s23, 4  ;;  %s697_s24 = int_to_ptr.vmem [resolvable:$true] %s696_s24 }
 0x320   :  { %s983_s25 = scalar_lea.vmem %s697_s24, 128  ;;  %p988_p11 = scmp.lt.s32.totalorder %s697_s24, %s697_s24 }
 0x321   :  { %p984_p10 = scmp.ne.s32.totalorder %s697_s24, %s983_s25  ;;  %p989_p12 = scmp.lt.s32.totalorder %s983_s25, %s983_s25 }
 0x323   :  { %p990_p13 = por %p989_p12, %p988_p11 }
 0x325   :  { %p991_p0 = pnand %p990_p13, %p984_p10 }
 0x3db   :  { %v683_v2 = vpop.f32.mrf.mxu1 }
 0x3dc   :  { %v684_v3 = vadd.f32 %v768_v21, %v683_v2 }
 0x3dd   :  { %v901_v4 = vpop.f32.mrf.mxu1 }
 0x3de   :  { %689 = vst [vmem:[#allocation5] sm:$0xff] %v684_v3 }
 0x3df   :  { %v686_v5 = vpop.f32.mrf.mxu1 }
 0x3e0   :  { %994 = shalt.err (!%p991_p0)
}
 0x3e1   :  { %699 = dma.vmem_to_hbm [thread:$0]  %s697_s24, 128, %s1265_s9, [#allocation4]   ;;  %v902_v6 = vpop.f32.mrf.mxu1 }
 0x3e2   :  { %1005 = dma.done.wait [#allocation4], 128  }
 0x3e3   :  { %1006 = vsyncadd [#allocation4], 4294967168 }
 0x3e4   :  { %1007 = dma.done.wait [#allocation7], 128  }
 0x3e5   :  { %1008 = vsyncadd [#allocation7], 4294967168 }
 0x3e6   :  { %716 = vsyncpa [#allocation3], 1 }
 0x3e7   :  { %717 = vsyncpa [#allocation4], 1 }
 0x3e8   :  { %718 = vsyncpa [#allocation7], 1 }

</bundles_post_ra>
